<compile_context>
chip_gen: v6e
topology: v6e:2x2x1
jax: 0.10.0
libtpu: 0.0.40
codegen_flags: <defaults>
</compile_context>

<pallas_src>
import functools

import jax
import jax.numpy as jnp
import numpy as np
from jax.experimental import pallas as pl
from jax.experimental.pallas import tpu as pltpu


# ----------------------------------------------------------------------------
# Pallas kernel
# ----------------------------------------------------------------------------
def _make_dcgru_kernel(S, K):
    """Build the DCGRU-cell kernel. S: num_supports, K: max_diffusion_step."""

    def kernel(sup_ref, xi_ref, xs_ref,
               wri_ref, wui_ref, wci_ref,
               wrs_ref, wus_ref, wcs_ref,
               br_ref, bu_ref, bc_ref,
               out_ref):
        f32 = jnp.float32
        x_inp = xi_ref[...]                      # (B*N, Di)
        x_st = xs_ref[...]                       # (B*N, U)

        def cheb_stack(x0):
            # Chebyshev diffusion stack [T_0 x0 | T_1 x0 | ...] for all batches
            # at once (block-diagonal support), following the torch recursion
            # (including its x0/x1 carry across supports).
            xs = [x0]
            x0v = x0
            for s in range(S):
                sup = sup_ref[s]                 # (B*N, B*N) block-diagonal
                if K > 0:
                    x1v = jnp.dot(sup, x0v, preferred_element_type=f32)
                    xs.append(x1v)
                    for _ in range(2, K + 1):
                        x2v = (2.0 * jnp.dot(sup, x1v, preferred_element_type=f32)
                               - x0v)
                        xs.append(x2v)
                        x1v, x0v = x2v, x1v
            if len(xs) == 1:
                return xs[0]
            return jnp.concatenate(xs, axis=-1)  # lane-stack of the M orders

        # Diffusions, shared across gate and candidate where possible.
        d_inp = cheb_stack(x_inp)                # (B*N, M*Di)
        d_st = cheb_stack(x_st)                  # (B*N, M*U)

        # Input-feature contributions (computed once, reused by candidate).
        inp_r = jnp.dot(d_inp, wri_ref[...], preferred_element_type=f32)
        inp_u = jnp.dot(d_inp, wui_ref[...], preferred_element_type=f32)
        inp_c = jnp.dot(d_inp, wci_ref[...], preferred_element_type=f32)

        # Gate: separate r / u accumulators (no lane slice of a 2U-wide result).
        r = jax.nn.sigmoid(
            inp_r
            + jnp.dot(d_st, wrs_ref[...], preferred_element_type=f32)
            + br_ref[...])
        u = jax.nn.sigmoid(
            inp_u
            + jnp.dot(d_st, wus_ref[...], preferred_element_type=f32)
            + bu_ref[...])

        # Candidate: only the state part needs re-diffusing (linearity).
        d_rst = cheb_stack(r * x_st)             # (B*N, M*U)
        c = jnp.tanh(
            inp_c
            + jnp.dot(d_rst, wcs_ref[...], preferred_element_type=f32)
            + bc_ref[...])

        # Single contiguous (B*N, U) writeback.
        out_ref[...] = u * x_st + (1.0 - u) * c

    return kernel


# ----------------------------------------------------------------------------
# Wrapper
# ----------------------------------------------------------------------------
def dcgru_cell_pallas(supports, inputs, state, w_gate, b_gate, w_cand, b_cand,
                      *, num_nodes, input_dim, num_units, max_diffusion_step):
    """Runs one DCGRUCell step.

    supports: (S, N, N) float32
    inputs:   (B, N * input_dim)
    state:    (B, N * num_units)
    w_gate:   (F * M, 2 * num_units), b_gate: (2 * num_units,)
    w_cand:   (F * M, num_units),     b_cand: (num_units,)
    returns:  new_state (B, N * num_units)   (output == new_state)
    """
    B = inputs.shape[0]
    N, Di, U, K = num_nodes, input_dim, num_units, max_diffusion_step
    S = supports.shape[0]
    M = S * K + 1
    F = Di + U
    BN = B * N
    f32 = jnp.float32

    supports = supports.astype(f32)
    x_inp = inputs.astype(f32).reshape(BN, Di)          # row index b*N + n
    x_st = state.astype(f32).reshape(BN, U)

    # Block-diagonal supports: one dot per Chebyshev order covers all batches.
    eye_b = jnp.eye(B, dtype=f32)
    sup_bd = jnp.einsum('ab,snm->sanbm', eye_b, supports).reshape(S, BN, BN)

    # Host-side weight restructuring.
    # Torch weight rows are indexed f*M + m, features f = [input (Di) | state (U)].
    # Re-block into input-rows (row m*Di + f) and state-rows (row m*U + f) to
    # match the lane-stacked diffusion operands.
    def split_weight(w, out_dim):
        w3 = w.astype(f32).reshape(F, M, out_dim)                         # [f, m, :]
        w_i = jnp.transpose(w3[:Di], (1, 0, 2)).reshape(M * Di, out_dim)  # m*Di + f
        w_s = jnp.transpose(w3[Di:], (1, 0, 2)).reshape(M * U, out_dim)   # m*U + f
        return w_i, w_s

    wg_i, wg_s = split_weight(w_gate, 2 * U)
    wc_i, wc_s = split_weight(w_cand, U)
    wr_i, wu_i = wg_i[:, :U], wg_i[:, U:]
    wr_s, wu_s = wg_s[:, :U], wg_s[:, U:]
    b_r = b_gate[:U].astype(f32).reshape(1, U)
    b_u = b_gate[U:].astype(f32).reshape(1, U)
    b_c = b_cand.astype(f32).reshape(1, U)

    kernel = _make_dcgru_kernel(S, K)
    vmem = pl.BlockSpec(memory_space=pltpu.MemorySpace.VMEM)

    new_state = pl.pallas_call(
        kernel,
        out_shape=jax.ShapeDtypeStruct((BN, U), f32),
        in_specs=[vmem] * 12,
        out_specs=vmem,
    )(sup_bd, x_inp, x_st,
      wr_i, wu_i, wc_i,
      wr_s, wu_s, wc_s,
      b_r, b_u, b_c)

    return new_state.reshape(B, N * U)


# ----------------------------------------------------------------------------
# Pure-JAX reference (mirrors the PyTorch code line-by-line) for verification
# ----------------------------------------------------------------------------
def _ref_gconv(supports, inputs, state, W, bias, K, N, out_dim):
    B = inputs.shape[0]
    inp = inputs.reshape(B, N, -1)
    st = state.reshape(B, N, -1)
    x0 = jnp.concatenate([inp, st], axis=2)
    F = x0.shape[-1]
    xs = [x0]
    if K > 0:
        x0v = x0
        for s in range(supports.shape[0]):
            sup = supports[s]
            x1v = jnp.einsum('nm,bmf->bnf', sup, x0v)
            xs.append(x1v)
            for _ in range(2, K + 1):
                x2v = 2.0 * jnp.einsum('nm,bmf->bnf', sup, x1v) - x0v
                xs.append(x2v)
                x1v, x0v = x2v, x1v
    M = supports.shape[0] * K + 1
    x = jnp.stack(xs, axis=1)                       # (B, M, N, F)
    x = jnp.transpose(x, (0, 2, 3, 1)).reshape(B * N, F * M)
    x = x @ W + bias
    return x.reshape(B, N * out_dim)


def _ref_cell(supports, inputs, state, Wg, bg, Wc, bc, K, N, U):
    value = jax.nn.sigmoid(_ref_gconv(supports, inputs, state, Wg, bg, K, N, 2 * U))
    value = value.reshape(-1, N, 2 * U)
    r = value[..., :U].reshape(-1, N * U)
    u = value[..., U:].reshape(-1, N * U)
    c = jnp.tanh(_ref_gconv(supports, inputs, r * state, Wc, bc, K, N, U))
    return u * state + (1.0 - u) * c


# ----------------------------------------------------------------------------
# Main
# ----------------------------------------------------------------------------
if __name__ == "__main__":
    # Module configuration (filter_type='laplacian' -> 1 support)
    B = 2
    N = 16            # num_nodes
    Di = 4            # input_dim
    U = 32            # num_units
    K = 2             # max_diffusion_step
    S = 1             # num_supports
    M = S * K + 1
    F = Di + U

    key = jax.random.PRNGKey(0)
    k_sup, k_inp, k_st, k_wg, k_wc = jax.random.split(key, 5)

    # Deterministic synthetic support (normalized so diffusion is well-behaved)
    supports = jax.random.normal(k_sup, (S, N, N), dtype=jnp.float32) / jnp.float32(N)

    inputs = jax.random.normal(k_inp, (B, N * Di), dtype=jnp.float32)
    state = jax.random.normal(k_st, (B, N * U), dtype=jnp.float32)

    # xavier_normal_(gain=1.414); biases init to bias_start=0.0 (constructor default)
    def xavier_normal(k, fan_in, fan_out, gain=1.414):
        std = gain * np.sqrt(2.0 / (fan_in + fan_out))
        return jax.random.normal(k, (fan_in, fan_out), dtype=jnp.float32) * std

    w_gate = xavier_normal(k_wg, F * M, 2 * U)
    b_gate = jnp.zeros((2 * U,), dtype=jnp.float32)
    w_cand = xavier_normal(k_wc, F * M, U)
    b_cand = jnp.zeros((U,), dtype=jnp.float32)

    run = functools.partial(
        dcgru_cell_pallas,
        num_nodes=N, input_dim=Di, num_units=U, max_diffusion_step=K)

    out = jax.jit(run)(supports, inputs, state, w_gate, b_gate, w_cand, b_cand)
    out = jax.block_until_ready(out)

    ref = _ref_cell(supports, inputs, state, w_gate, b_gate, w_cand, b_cand, K, N, U)
    ref = jax.block_until_ready(ref)

    assert out.shape == (B, N * U)
    np.testing.assert_allclose(np.asarray(out), np.asarray(ref), rtol=1e-4, atol=1e-4)

    print("KERNEL_OK")
</pallas_src>

<mosaic_0001>
module attributes {stable_mosaic.version = 11 : i64} {
  func.func @kernel(%arg0: memref<1x32x32xf32, #tpu.memory_space<vmem>>, %arg1: memref<32x4xf32, #tpu.memory_space<vmem>>, %arg2: memref<32x32xf32, #tpu.memory_space<vmem>>, %arg3: memref<12x32xf32, #tpu.memory_space<vmem>>, %arg4: memref<12x32xf32, #tpu.memory_space<vmem>>, %arg5: memref<12x32xf32, #tpu.memory_space<vmem>>, %arg6: memref<96x32xf32, #tpu.memory_space<vmem>>, %arg7: memref<96x32xf32, #tpu.memory_space<vmem>>, %arg8: memref<96x32xf32, #tpu.memory_space<vmem>>, %arg9: memref<1x32xf32, #tpu.memory_space<vmem>>, %arg10: memref<1x32xf32, #tpu.memory_space<vmem>>, %arg11: memref<1x32xf32, #tpu.memory_space<vmem>>, %arg12: memref<32x32xf32, #tpu.memory_space<vmem>>) attributes {dimension_semantics = [], scalar_prefetch = 0 : i64, scratch_operands = 0 : i64, tpu.core_type = #tpu.core_type<tc>} {
    %c0 = arith.constant 0 : index
    %c0_0 = arith.constant 0 : index
    %0 = vector.load %arg1[%c0, %c0_0] : memref<32x4xf32, #tpu.memory_space<vmem>>, vector<32x4xf32>
    %c0_1 = arith.constant 0 : index
    %c0_2 = arith.constant 0 : index
    %1 = vector.load %arg2[%c0_1, %c0_2] : memref<32x32xf32, #tpu.memory_space<vmem>>, vector<32x32xf32>
    %c0_3 = arith.constant 0 : index
    %c0_4 = arith.constant 0 : index
    %c0_5 = arith.constant 0 : index
    %2 = vector.load %arg0[%c0_3, %c0_4, %c0_5] : memref<1x32x32xf32, #tpu.memory_space<vmem>>, vector<1x32x32xf32>
    %3 = vector.shape_cast %2 : vector<1x32x32xf32> to vector<32x32xf32>
    %cst = arith.constant dense<0.000000e+00> : vector<32x4xf32>
    %4 = tpu.matmul %3, %0, %cst {dimension_numbers = #tpu.dot_dimension_numbers<[1], [0], [0], [1], [0, 0, 1, 1], [], []>} : vector<32x32xf32>, vector<32x4xf32>, vector<32x4xf32> -> vector<32x4xf32>
    %cst_6 = arith.constant dense<0.000000e+00> : vector<32x4xf32>
    %5 = tpu.matmul %3, %4, %cst_6 {dimension_numbers = #tpu.dot_dimension_numbers<[1], [0], [0], [1], [0, 0, 1, 1], [], []>} : vector<32x32xf32>, vector<32x4xf32>, vector<32x4xf32> -> vector<32x4xf32>
    %cst_7 = arith.constant 2.000000e+00 : f32
    %6 = vector.broadcast %cst_7 : f32 to vector<32x4xf32>
    %7 = arith.mulf %6, %5 : vector<32x4xf32>
    %8 = arith.subf %7, %0 : vector<32x4xf32>
    %9 = tpu.concatenate %0, %4, %8 in 1 : vector<32x4xf32>, vector<32x4xf32>, vector<32x4xf32> -> vector<32x12xf32>
    %c0_8 = arith.constant 0 : index
    %c0_9 = arith.constant 0 : index
    %c0_10 = arith.constant 0 : index
    %10 = vector.load %arg0[%c0_8, %c0_9, %c0_10] : memref<1x32x32xf32, #tpu.memory_space<vmem>>, vector<1x32x32xf32>
    %11 = vector.shape_cast %10 : vector<1x32x32xf32> to vector<32x32xf32>
    %cst_11 = arith.constant dense<0.000000e+00> : vector<32x32xf32>
    %12 = tpu.matmul %11, %1, %cst_11 {dimension_numbers = #tpu.dot_dimension_numbers<[1], [0], [0], [1], [0, 0, 1, 1], [], []>} : vector<32x32xf32>, vector<32x32xf32>, vector<32x32xf32> -> vector<32x32xf32>
    %cst_12 = arith.constant dense<0.000000e+00> : vector<32x32xf32>
    %13 = tpu.matmul %11, %12, %cst_12 {dimension_numbers = #tpu.dot_dimension_numbers<[1], [0], [0], [1], [0, 0, 1, 1], [], []>} : vector<32x32xf32>, vector<32x32xf32>, vector<32x32xf32> -> vector<32x32xf32>
    %cst_13 = arith.constant 2.000000e+00 : f32
    %14 = vector.broadcast %cst_13 : f32 to vector<32x32xf32>
    %15 = arith.mulf %14, %13 : vector<32x32xf32>
    %16 = arith.subf %15, %1 : vector<32x32xf32>
    %17 = tpu.concatenate %1, %12, %16 in 1 : vector<32x32xf32>, vector<32x32xf32>, vector<32x32xf32> -> vector<32x96xf32>
    %c0_14 = arith.constant 0 : index
    %c0_15 = arith.constant 0 : index
    %18 = vector.load %arg3[%c0_14, %c0_15] : memref<12x32xf32, #tpu.memory_space<vmem>>, vector<12x32xf32>
    %cst_16 = arith.constant dense<0.000000e+00> : vector<32x32xf32>
    %19 = tpu.matmul %9, %18, %cst_16 {dimension_numbers = #tpu.dot_dimension_numbers<[1], [0], [0], [1], [0, 0, 1, 1], [], []>} : vector<32x12xf32>, vector<12x32xf32>, vector<32x32xf32> -> vector<32x32xf32>
    %c0_17 = arith.constant 0 : index
    %c0_18 = arith.constant 0 : index
    %20 = vector.load %arg4[%c0_17, %c0_18] : memref<12x32xf32, #tpu.memory_space<vmem>>, vector<12x32xf32>
    %cst_19 = arith.constant dense<0.000000e+00> : vector<32x32xf32>
    %21 = tpu.matmul %9, %20, %cst_19 {dimension_numbers = #tpu.dot_dimension_numbers<[1], [0], [0], [1], [0, 0, 1, 1], [], []>} : vector<32x12xf32>, vector<12x32xf32>, vector<32x32xf32> -> vector<32x32xf32>
    %c0_20 = arith.constant 0 : index
    %c0_21 = arith.constant 0 : index
    %22 = vector.load %arg5[%c0_20, %c0_21] : memref<12x32xf32, #tpu.memory_space<vmem>>, vector<12x32xf32>
    %cst_22 = arith.constant dense<0.000000e+00> : vector<32x32xf32>
    %23 = tpu.matmul %9, %22, %cst_22 {dimension_numbers = #tpu.dot_dimension_numbers<[1], [0], [0], [1], [0, 0, 1, 1], [], []>} : vector<32x12xf32>, vector<12x32xf32>, vector<32x32xf32> -> vector<32x32xf32>
    %c0_23 = arith.constant 0 : index
    %c0_24 = arith.constant 0 : index
    %24 = vector.load %arg6[%c0_23, %c0_24] : memref<96x32xf32, #tpu.memory_space<vmem>>, vector<96x32xf32>
    %cst_25 = arith.constant dense<0.000000e+00> : vector<32x32xf32>
    %25 = tpu.matmul %17, %24, %cst_25 {dimension_numbers = #tpu.dot_dimension_numbers<[1], [0], [0], [1], [0, 0, 1, 1], [], []>} : vector<32x96xf32>, vector<96x32xf32>, vector<32x32xf32> -> vector<32x32xf32>
    %26 = arith.addf %19, %25 : vector<32x32xf32>
    %c0_26 = arith.constant 0 : index
    %c0_27 = arith.constant 0 : index
    %27 = vector.load %arg9[%c0_26, %c0_27] : memref<1x32xf32, #tpu.memory_space<vmem>>, vector<1x32xf32>
    %28 = vector.broadcast %27 : vector<1x32xf32> to vector<32x32xf32>
    %29 = arith.addf %26, %28 : vector<32x32xf32>
    %30 = arith.negf %29 : vector<32x32xf32>
    %31 = math.exp %30 : vector<32x32xf32>
    %cst_28 = arith.constant 1.000000e+00 : f32
    %32 = vector.broadcast %cst_28 : f32 to vector<32x32xf32>
    %33 = arith.addf %32, %31 : vector<32x32xf32>
    %34 = arith.divf %32, %33 : vector<32x32xf32>
    %c0_29 = arith.constant 0 : index
    %c0_30 = arith.constant 0 : index
    %35 = vector.load %arg7[%c0_29, %c0_30] : memref<96x32xf32, #tpu.memory_space<vmem>>, vector<96x32xf32>
    %cst_31 = arith.constant dense<0.000000e+00> : vector<32x32xf32>
    %36 = tpu.matmul %17, %35, %cst_31 {dimension_numbers = #tpu.dot_dimension_numbers<[1], [0], [0], [1], [0, 0, 1, 1], [], []>} : vector<32x96xf32>, vector<96x32xf32>, vector<32x32xf32> -> vector<32x32xf32>
    %37 = arith.addf %21, %36 : vector<32x32xf32>
    %c0_32 = arith.constant 0 : index
    %c0_33 = arith.constant 0 : index
    %38 = vector.load %arg10[%c0_32, %c0_33] : memref<1x32xf32, #tpu.memory_space<vmem>>, vector<1x32xf32>
    %39 = vector.broadcast %38 : vector<1x32xf32> to vector<32x32xf32>
    %40 = arith.addf %37, %39 : vector<32x32xf32>
    %41 = arith.negf %40 : vector<32x32xf32>
    %42 = math.exp %41 : vector<32x32xf32>
    %cst_34 = arith.constant 1.000000e+00 : f32
    %43 = vector.broadcast %cst_34 : f32 to vector<32x32xf32>
    %44 = arith.addf %43, %42 : vector<32x32xf32>
    %45 = arith.divf %43, %44 : vector<32x32xf32>
    %46 = arith.mulf %34, %1 : vector<32x32xf32>
    %c0_35 = arith.constant 0 : index
    %c0_36 = arith.constant 0 : index
    %c0_37 = arith.constant 0 : index
    %47 = vector.load %arg0[%c0_35, %c0_36, %c0_37] : memref<1x32x32xf32, #tpu.memory_space<vmem>>, vector<1x32x32xf32>
    %48 = vector.shape_cast %47 : vector<1x32x32xf32> to vector<32x32xf32>
    %cst_38 = arith.constant dense<0.000000e+00> : vector<32x32xf32>
    %49 = tpu.matmul %48, %46, %cst_38 {dimension_numbers = #tpu.dot_dimension_numbers<[1], [0], [0], [1], [0, 0, 1, 1], [], []>} : vector<32x32xf32>, vector<32x32xf32>, vector<32x32xf32> -> vector<32x32xf32>
    %cst_39 = arith.constant dense<0.000000e+00> : vector<32x32xf32>
    %50 = tpu.matmul %48, %49, %cst_39 {dimension_numbers = #tpu.dot_dimension_numbers<[1], [0], [0], [1], [0, 0, 1, 1], [], []>} : vector<32x32xf32>, vector<32x32xf32>, vector<32x32xf32> -> vector<32x32xf32>
    %cst_40 = arith.constant 2.000000e+00 : f32
    %51 = vector.broadcast %cst_40 : f32 to vector<32x32xf32>
    %52 = arith.mulf %51, %50 : vector<32x32xf32>
    %53 = arith.subf %52, %46 : vector<32x32xf32>
    %54 = tpu.concatenate %46, %49, %53 in 1 : vector<32x32xf32>, vector<32x32xf32>, vector<32x32xf32> -> vector<32x96xf32>
    %c0_41 = arith.constant 0 : index
    %c0_42 = arith.constant 0 : index
    %55 = vector.load %arg8[%c0_41, %c0_42] : memref<96x32xf32, #tpu.memory_space<vmem>>, vector<96x32xf32>
    %cst_43 = arith.constant dense<0.000000e+00> : vector<32x32xf32>
    %56 = tpu.matmul %54, %55, %cst_43 {dimension_numbers = #tpu.dot_dimension_numbers<[1], [0], [0], [1], [0, 0, 1, 1], [], []>} : vector<32x96xf32>, vector<96x32xf32>, vector<32x32xf32> -> vector<32x32xf32>
    %57 = arith.addf %23, %56 : vector<32x32xf32>
    %c0_44 = arith.constant 0 : index
    %c0_45 = arith.constant 0 : index
    %58 = vector.load %arg11[%c0_44, %c0_45] : memref<1x32xf32, #tpu.memory_space<vmem>>, vector<1x32xf32>
    %59 = vector.broadcast %58 : vector<1x32xf32> to vector<32x32xf32>
    %60 = arith.addf %57, %59 : vector<32x32xf32>
    %61 = math.tanh %60 : vector<32x32xf32>
    %62 = arith.mulf %45, %1 : vector<32x32xf32>
    %cst_46 = arith.constant 1.000000e+00 : f32
    %63 = vector.broadcast %cst_46 : f32 to vector<32x32xf32>
    %64 = arith.subf %63, %45 : vector<32x32xf32>
    %65 = arith.mulf %64, %61 : vector<32x32xf32>
    %66 = arith.addf %62, %65 : vector<32x32xf32>
    %c0_47 = arith.constant 0 : index
    %c0_48 = arith.constant 0 : index
    %67 = vector.load %arg12[%c0_47, %c0_48] : memref<32x32xf32, #tpu.memory_space<vmem>>, vector<32x32xf32>
    tpu.vector_store %arg12[%c0_47, %c0_48], %66 {strides = array<i32>} : memref<32x32xf32, #tpu.memory_space<vmem>>, vector<32x32xf32>,
    return
  }
}

</mosaic_0001>

<bundles_post_ra>
// kernel: dcgru_cell_pallas.1
= control target key start
LH: loop header
LB: loop body
LE: loop exit
PB: predicated region body
PF: predicated region fallthrough
CT: control target
= control target key end

     0   :  { %vm53_vm0 = vcmask 261120   ;;  %s1860_s25 = smov 32   ;;  %s1861_s26 = smov 4   ;;  %vm634_vm1 = vcmask 1043456   ;;  %vm276_vm2 = vcmask 31744   ;;  %vm281_vm3 = vcmask 64512   ;;  %s2369_s1 = inlined_call_operand.vmem [shape: f32[32,4], index: 1, kind: input, shape index: {}]   ;;  %s2370_s2 = inlined_call_operand.vmem [shape: f32[32,32], index: 2, kind: input, shape index: {}]   ;;  %s2371_s0 = inlined_call_operand.vmem [shape: f32[1,32,32], index: 0, kind: input, shape index: {}]   ;;  %s2372_s6 = inlined_call_operand.vmem [shape: f32[96,32], index: 6, kind: input, shape index: {}]   ;;  %s2373_s3 = inlined_call_operand.vmem [shape: f32[12,32], index: 3, kind: input, shape index: {}]   ;;  %s2374_s7 = inlined_call_operand.vmem [shape: f32[96,32], index: 7, kind: input, shape index: {}]   ;;  %s2375_s4 = inlined_call_operand.vmem [shape: f32[12,32], index: 4, kind: input, shape index: {}]   ;;  %s2376_s9 = inlined_call_operand.vmem [shape: f32[1,32], index: 9, kind: input, shape index: {}]   ;;  %s2377_s5 = inlined_call_operand.vmem [shape: f32[12,32], index: 5, kind: input, shape index: {}]   ;;  %s2378_s8 = inlined_call_operand.vmem [shape: f32[96,32], index: 8, kind: input, shape index: {}]   ;;  %s2379_s10 = inlined_call_operand.vmem [shape: f32[1,32], index: 10, kind: input, shape index: {}]   ;;  %s2380_s11 = inlined_call_operand.vmem [shape: f32[1,32], index: 11, kind: input, shape index: {}]   ;;  %s2381_s12 = inlined_call_operand.vmem [shape: f32[32,32], index: 12, kind: output, shape index: {}]  }
   0x1   :  { %v1932_v0 = vld [vmem:[%s2369_s1 + $0x18] sm:$0xff]  ;;  %v1942_v2 = vld [vmem:[%s2369_s1 + $0x10] sm:$0xff]  ;;  %v1956_v4 = vld [vmem:[%s2369_s1 + $0x8] sm:$0xff]  ;;  %s1862_s13 = smov 8   ;;  %s1863_s18 = smov 64   ;;  %vm621_vm4 = vcmask 97280  }
   0x2   :  { %v1937_v1 = vld [vmem:[%s2370_s2 + $0x18] sm:$0xff]  ;;  %1612 = vmatprep.subr.mxu1 %v1932_v0  ;;  %v1949_v3 = vld [vmem:[%s2370_s2 + $0x10] sm:$0xff]  ;;  %v1961_v5 = vld [vmem:[%s2370_s2 + $0x8] sm:$0xff]  ;;  %vm523_vm5 = vcmask 785408   ;;  %vm500_vm6 = vcmask 523264  }
   0x3   :  { %1640 = vmatprep.subr.mxu0 %v1937_v1  ;;  %1613 = vmatpush3.msra.mxu1 %v1932_v0  ;;  %v1970_v6 = vld [vmem:[%s2369_s1] sm:$0xff]  ;;  %v1991_v9 = vld [vmem:[%s2371_s0 + $0x8] sm:$0xff]  ;;  %v1999_v10 = vld [vmem:[%s2371_s0 + $0x10] sm:$0xff] }
   0x4   :  { %1641 = vmatpush3.msra.mxu0 %v1937_v1  ;;  %1614 = vmatprep.subr.mxu1 %v1942_v2  ;;  %v1975_v7 = vld [vmem:[%s2370_s2] sm:$0xff]  ;;  %v2013_v11 = vld [vmem:[%s2371_s0 + $0x18] sm:$0xff]  ;;  %v521_v21 = vld [vmem:[%s2372_s6 + $0x50] sm:$0xff] }
   0x5   :  { %1642 = vmatprep.subr.mxu0 %v1949_v3  ;;  %1615 = vmatpush3.msra.mxu1 %v1942_v2  ;;  %v1982_v8 = vld [vmem:[%s2371_s0] sm:$0xff]  ;;  %v522_v20 = vld [vmem:[%s2372_s6 + $0x58] sm:$0xff]  ;;  %v506_v22 = vld [vmem:[%s2373_s3 + $0x8] sm:$0xf] }
   0x6   :  { %1643 = vmatpush3.msra.mxu0 %v1949_v3  ;;  %1616 = vmatprep.subr.mxu1 %v1956_v4  ;;  %v520_v23 = vld [vmem:[%s2372_s6 + $0x48] sm:$0xff]  ;;  %v519_v24 = vld [vmem:[%s2372_s6 + $0x40] sm:$0xff]  ;;  %v518_v25 = vld [vmem:[%s2372_s6 + $0x38] sm:$0xff] }
   0x7   :  { %1644 = vmatprep.subr.mxu0 %v1961_v5  ;;  %1617 = vmatpush3.msra.mxu1 %v1956_v4  ;;  %v505_v26 = vld [vmem:[%s2373_s3] sm:$0xff]  ;;  %v517_v27 = vld [vmem:[%s2372_s6 + $0x30] sm:$0xff]  ;;  %v2074_v28 = vld [vmem:[%s2374_s7 + $0x58] sm:$0xff] }
   0x8   :  { %1645 = vmatpush3.msra.mxu0 %v1961_v5  ;;  %1618 = vmatprep.subr.mxu1 %v1970_v6  ;;  %v516_v29 = vld [vmem:[%s2372_s6 + $0x28] sm:$0xff]  ;;  %v515_v30 = vld [vmem:[%s2372_s6 + $0x20] sm:$0xff]  ;;  %v514_v32 = vld [vmem:[%s2372_s6 + $0x18] sm:$0xff] }
   0x9   :  { %1646 = vmatprep.subr.mxu0 %v1975_v7  ;;  %1619 = vmatpush3.msra.mxu1 %v1970_v6  ;;  %v513_v37 = vld [vmem:[%s2372_s6 + $0x10] sm:$0xff]  ;;  %v512_v40 = vld [vmem:[%s2372_s6 + $0x8] sm:$0xff]  ;;  %v511_v43 = vld [vmem:[%s2372_s6] sm:$0xff] }
   0xa   :  { %1620 = vmatprep.mubr.msk.f32.mxu1 %vm53_vm0, %v1982_v8  ;;  %1647 = vmatpush3.msra.mxu0 %v1975_v7  ;;  %v2104_v54 = vld [vmem:[%s2375_s4 + $0x8] sm:$0xf] }
   0xb   :  { %1648 = vmatprep.mubr.msk.f32.mxu0 %vm53_vm0, %v1982_v8  ;;  %1621 = vmatmul.mubr.msk.f32.vlgmr.msra.gmra.mxu1 %vm53_vm0, %v1991_v9 }
   0xc   :  { %1649 = vmatmul.mubr.msk.f32.vlgmr.msra.gmra.mxu0 %vm53_vm0, %v1991_v9  ;;  %1623 = vmatprep.mubr.msk.f32.mxu1 %vm53_vm0, %v1999_v10 }
   0xd   :  { %1651 = vmatprep.mubr.msk.f32.mxu0 %vm53_vm0, %v1999_v10  ;;  %1668 = vmatprep.subr.mxu0 %v522_v20 }
   0xe   :  { %1669 = vmatpush3.msra.mxu0 %v522_v20 }
   0xf   :  { %1624 = vmatmul.mubr.msk.f32.gmra.mxu1 %vm53_vm0, %v2013_v11  ;;  %1670 = vmatprep.subr.mxu0 %v521_v21 }
  0x10   :  { %1652 = vmatmul.mubr.msk.f32.gmra.mxu0 %vm53_vm0, %v2013_v11  ;;  %1634 = vmatprep.mubr.msk.f32.mxu1 %vm53_vm0, %v1982_v8 }
  0x11   :  { %1671 = vmatpush3.msra.mxu0 %v521_v21 }
  0x12   :  { %1672 = vmatprep.subr.mxu0 %v520_v23 }
  0x13   :  { %1673 = vmatpush3.msra.mxu0 %v520_v23 }
  0x14   :  { %1674 = vmatprep.subr.mxu0 %v519_v24 }
  0x15   :  { %1675 = vmatpush3.msra.mxu0 %v519_v24 }
  0x16   :  { %1676 = vmatprep.subr.mxu0 %v518_v25 }
  0x17   :  { %1677 = vmatpush3.msra.mxu0 %v518_v25 }
  0x18   :  { %1678 = vmatprep.subr.mxu0 %v517_v27 }
  0x19   :  { %1679 = vmatpush3.msra.mxu0 %v517_v27 }
  0x1a   :  { %1680 = vmatprep.subr.mxu0 %v516_v29 }
  0x1b   :  { %1681 = vmatpush3.msra.mxu0 %v516_v29  ;;  %v764_v29 = vld [vmem:[%s2374_s7 + $0x30] sm:$0xff] }
  0x1c   :  { %1682 = vmatprep.subr.mxu0 %v515_v30 }
  0x1d   :  { %1683 = vmatpush3.msra.mxu0 %v515_v30 }
  0x1e   :  { %1684 = vmatprep.subr.mxu0 %v514_v32 }
  0x1f   :  { %1685 = vmatpush3.msra.mxu0 %v514_v32  ;;  %v763_v32 = vld [vmem:[%s2374_s7 + $0x28] sm:$0xff] }
  0x20   :  { %1686 = vmatprep.subr.mxu0 %v513_v37 }
  0x21   :  { %1687 = vmatpush3.msra.mxu0 %v513_v37 }
  0x22   :  { %1688 = vmatprep.subr.mxu0 %v512_v40 }
  0x23   :  { %1689 = vmatpush3.msra.mxu0 %v512_v40  ;;  %v507_v40 = vld [vmem:[%s2375_s4] sm:$0xff] }
  0x24   :  { %1690 = vmatprep.subr.mxu0 %v511_v43 }
  0x25   :  { %1691 = vmatpush3.msra.mxu0 %v511_v43 }
  0x26   :  { %1738 = vmatprep.subr.msk.mxu0 %vm634_vm1, %v2104_v54 }
  0xcb   :  { %v1622_v12 = vpop.f32.mrf.mxu1 }
  0xcc   :  { %v1650_v13 = vpop.f32.mrf.mxu0  ;;  %250 = vrot.lane.b32.xlu1 %v1622_v12, %s1861_s26 }
  0xcd   :  { %470 = vrot.lane.b32.xlu0 %v1650_v13, %s1860_s25  ;;  %v132_v14 = vpop.f32.mrf.mxu1 }
  0xce   :  { %v352_v15 = vpop.f32.mrf.mxu0 }
  0xcf   :  { %v1625_v16 = vpop.f32.mrf.mxu1 }
  0xd0   :  { %v1653_v17 = vpop.f32.mrf.mxu0  ;;  %1626 = vmatprep.subr.mxu1 %v1625_v16 }
  0xd1   :  { %248 = vrot.lane.b32.xlu0 %v132_v14, %s1861_s26  ;;  %v142_v18 = vpop.f32.mrf.mxu1  ;;  %1627 = vmatpush3.msra.mxu1 %v1625_v16 }
  0xd2   :  { %v362_v19 = vpop.f32.mrf.mxu0  ;;  %1628 = vmatprep.subr.mxu1 %v142_v18 }
  0xd3   :  { %472 = vrot.lane.b32.xlu1 %v362_v19, %s1860_s25  ;;  %1629 = vmatpush3.msra.mxu1 %v142_v18 }
  0xd4   :  { %1630 = vmatprep.subr.mxu1 %v1622_v12 }
  0xd5   :  { %468 = vrot.lane.b32.xlu0 %v352_v15, %s1860_s25  ;;  %1631 = vmatpush3.msra.mxu1 %v1622_v12 }
  0xd6   :  { %1632 = vmatprep.subr.mxu1 %v132_v14 }
  0xd7   :  { %1633 = vmatpush3.msra.mxu1 %v132_v14 }
  0xd8   :  { %1635 = vmatmul.mubr.msk.f32.vlgmr.msra.gmra.mxu1 %vm53_vm0, %v1991_v9  ;;  %1654 = vmatprep.subr.mxu1 %v1653_v17 }
  0xd9   :  { %254 = vrot.lane.b32.xlu0 %v1625_v16, %s1861_s26  ;;  %1637 = vmatprep.mubr.msk.f32.mxu1 %vm53_vm0, %v1999_v10 }
  0xda   :  { %1655 = vmatpush3.msra.mxu1 %v1653_v17 }
  0xdb   :  { %1656 = vmatprep.subr.mxu1 %v362_v19 }
  0xdc   :  { %1657 = vmatpush3.msra.mxu1 %v362_v19 }
  0xdd   :  { %474 = vrot.lane.b32.xlu0 %v1653_v17, %s1860_s25  ;;  %1638 = vmatmul.mubr.msk.f32.gmra.mxu1 %vm53_vm0, %v2013_v11 }
  0xde   :  { %1658 = vmatprep.subr.mxu1 %v1650_v13  ;;  %1662 = vmatprep.mubr.msk.f32.mxu1 %vm53_vm0, %v1982_v8 }
  0xdf   :  { %1659 = vmatpush3.msra.mxu1 %v1650_v13 }
  0xe0   :  { %1660 = vmatprep.subr.mxu1 %v352_v15 }
  0xe1   :  { %1661 = vmatpush3.msra.mxu1 %v352_v15  ;;  %252 = vrot.lane.b32.xlu0 %v142_v18, %s1861_s26 }
  0xe2   :  { %1663 = vmatmul.mubr.msk.f32.vlgmr.msra.gmra.mxu1 %vm53_vm0, %v1991_v9  ;;  %1698 = vmatprep.subr.msk.mxu1 %vm634_vm1, %v506_v22 }
  0xe3   :  { %1665 = vmatprep.mubr.msk.f32.mxu1 %vm53_vm0, %v1999_v10  ;;  %1699 = vmatpush3.msk.msra.mxu1 %vm634_vm1, %v506_v22  ;;  %v768_v22 = vld [vmem:[%s2374_s7 + $0x50] sm:$0xff] }
  0xe4   :  { %1700 = vmatprep.subr.mxu1 %v505_v26 }
  0xe5   :  { %1701 = vmatpush3.msra.mxu1 %v505_v26 }
  0xe6   :  { %1666 = vmatmul.mubr.msk.f32.gmra.mxu1 %vm53_vm0, %v2013_v11  ;;  %1708 = vmatprep.subr.mxu1 %v2074_v28 }
 0x13e   :  { %v251_v13 = vpop.permute.xlu1 %250 }
 0x13f   :  { %v471_v60 = vpop.permute.xlu0 %470  ;;  %v278_v19 = vsel %vm276_vm2, %v1956_v4, %v251_v13 }
 0x143   :  { %v249_v61 = vpop.permute.xlu0 %248 }
 0x144   :  { %v277_v17 = vsel %vm276_vm2, %v1970_v6, %v249_v61 }
 0x145   :  { %v473_v15 = vpop.permute.xlu1 %472 }
 0x146   :  { %v498_v37 = vsel %vm53_vm0, %v1949_v3, %v473_v15 }
 0x147   :  { %v469_v62 = vpop.permute.xlu0 %468 }
 0x148   :  { %v496_v30 = vsel %vm53_vm0, %v1975_v7, %v469_v62 }
 0x14b   :  { %v255_v63 = vpop.permute.xlu0 %254 }
 0x14c   :  { %v280_v25 = vsel %vm276_vm2, %v1932_v0, %v255_v63 }
 0x14f   :  { %v2114_v12 = vpop.permute.xlu0 %474 }
 0x150   :  { %v499_v43 = vsel %vm53_vm0, %v1937_v1, %v2114_v12 }
 0x153   :  { %v253_v14 = vpop.permute.xlu0 %252 }
 0x154   :  { %v279_v23 = vsel %vm276_vm2, %v1942_v2, %v253_v14 }
 0x198   :  { %v1636_v31 = vpop.f32.mrf.mxu1 }
 0x199   :  { %v237_v33 = vmul.f32 2.0, %v1636_v31 }
 0x19a   :  { %v217_v34 = vpop.f32.mrf.mxu1 }
 0x19b   :  { %v241_v35 = vsub.f32 %v237_v33, %v1956_v4  ;;  %v236_v36 = vmul.f32 2.0, %v217_v34  ;;  %v767_v4 = vld [vmem:[%s2374_s7 + $0x48] sm:$0xff]  ;;  %v497_v34 = vsel %vm53_vm0, %v1961_v5, %v471_v60 }
 0x19d   :  { %v240_v38 = vsub.f32 %v236_v36, %v1970_v6  ;;  %v1639_v39 = vpop.f32.mrf.mxu1  ;;  %266 = vrot.lane.b32.xlu0 %v241_v35, %s1862_s13  ;;  %v762_v35 = vld [vmem:[%s2374_s7 + $0x20] sm:$0xff] }
 0x19e   :  { %v239_v41 = vmul.f32 2.0, %v1639_v39  ;;  %v761_v39 = vld [vmem:[%s2374_s7 + $0x18] sm:$0xff] }
 0x19f   :  { %v227_v42 = vpop.f32.mrf.mxu1  ;;  %264 = vrot.lane.b32.xlu1 %v240_v38, %s1862_s13 }
 0x1a0   :  { %v243_v44 = vsub.f32 %v239_v41, %v1932_v0  ;;  %v238_v45 = vmul.f32 2.0, %v227_v42  ;;  %v760_v42 = vld [vmem:[%s2374_s7 + $0x10] sm:$0xff] }
 0x1a2   :  { %v1664_v46 = vpop.f32.mrf.mxu1  ;;  %v242_v47 = vsub.f32 %v238_v45, %v1942_v2  ;;  %270 = vrot.lane.b32.xlu0 %v243_v44, %s1862_s13  ;;  %v766_v2 = vld [vmem:[%s2374_s7 + $0x40] sm:$0xff]  ;;  %v759_v45 = vld [vmem:[%s2374_s7 + $0x8] sm:$0xff] }
 0x1a3   :  { %v457_v48 = vmul.f32 2.0, %v1664_v46 }
 0x1a4   :  { %v437_v49 = vpop.f32.mrf.mxu1  ;;  %268 = vrot.lane.b32.xlu1 %v242_v47, %s1862_s13  ;;  %v758_v47 = vld [vmem:[%s2374_s7] sm:$0xff] }
 0x1a5   :  { %v461_v50 = vsub.f32 %v457_v48, %v1961_v5  ;;  %v456_v52 = vmul.f32 2.0, %v437_v49 }
 0x1a6   :  { %v1667_v51 = vpop.f32.mrf.mxu1 }
 0x1a7   :  { %v460_v55 = vsub.f32 %v456_v52, %v1975_v7  ;;  %v459_v57 = vmul.f32 2.0, %v1667_v51  ;;  %v1461_v51 = vld [vmem:[%s2376_s9] ss:$0 sm:$0xff] }
 0x1a8   :  { %v447_v53 = vpop.f32.mrf.mxu1  ;;  %486 = vrot.lane.b32.xlu1 %v461_v50, %s1863_s18 }
 0x1a9   :  { %v458_v56 = vmul.f32 2.0, %v447_v53  ;;  %v463_v59 = vsub.f32 %v459_v57, %v1937_v1 }
 0x1ab   :  { %v462_v58 = vsub.f32 %v458_v56, %v1949_v3 }
 0x1ac   :  { %484 = vrot.lane.b32.xlu1 %v460_v55, %s1863_s18 }
 0x1b0   :  { %488 = vrot.lane.b32.xlu1 %v462_v58, %s1863_s18 }
 0x1b4   :  { %490 = vrot.lane.b32.xlu1 %v463_v59, %s1863_s18 }
 0x20f   :  { %v267_v16 = vpop.permute.xlu0 %266 }
 0x210   :  { %v2124_v21 = vsel %vm281_vm3, %v278_v19, %v267_v16 }
 0x211   :  { %v265_v18 = vpop.permute.xlu1 %264 }
 0x212   :  { %v2121_v20 = vsel %vm281_vm3, %v277_v17, %v265_v18 }
 0x213   :  { %1702 = vmatprep.mubr.msk.f32.mxu1 %vm621_vm4, %v2121_v20 }
 0x214   :  { %1703 = vmatmul.mubr.msk.f32.vlgmr.msra.gmra.mxu1 %vm621_vm4, %v2124_v21  ;;  %v271_v6 = vpop.permute.xlu0 %270 }
 0x215   :  { %1709 = vmatpush3.msra.mxu1 %v2074_v28  ;;  %v2145_v27 = vsel %vm281_vm3, %v280_v25, %v271_v6  ;;  %v765_v28 = vld [vmem:[%s2374_s7 + $0x38] sm:$0xff] }
 0x216   :  { %1710 = vmatprep.subr.mxu1 %v768_v22  ;;  %v269_v24 = vpop.permute.xlu1 %268 }
 0x217   :  { %v2142_v26 = vsel %vm281_vm3, %v279_v23, %v269_v24  ;;  %1711 = vmatpush3.msra.mxu1 %v768_v22 }
 0x218   :  { %1705 = vmatprep.mubr.msk.f32.mxu1 %vm621_vm4, %v2142_v26  ;;  %1712 = vmatprep.subr.mxu1 %v767_v4 }
 0x219   :  { %1706 = vmatmul.mubr.msk.f32.gmra.mxu1 %vm621_vm4, %v2145_v27 }
 0x21a   :  { %1713 = vmatpush3.msra.mxu1 %v767_v4  ;;  %v487_v0 = vpop.permute.xlu1 %486 }
 0x21b   :  { %1714 = vmatprep.subr.mxu1 %v766_v2  ;;  %v502_v36 = vsel %vm500_vm6, %v497_v34, %v487_v0 }
 0x21c   :  { %1715 = vmatpush3.msra.mxu1 %v766_v2 }
 0x21d   :  { %1716 = vmatprep.subr.mxu1 %v765_v28 }
 0x21e   :  { %1717 = vmatpush3.msra.mxu1 %v765_v28  ;;  %v485_v31 = vpop.permute.xlu1 %484 }
 0x21f   :  { %1718 = vmatprep.subr.mxu1 %v764_v29  ;;  %v501_v33 = vsel %vm500_vm6, %v496_v30, %v485_v31 }
 0x220   :  { %1719 = vmatpush3.msra.mxu1 %v764_v29  ;;  %1692 = vmatprep.mubr.msk.f32.mxu0 %vm523_vm5, %v501_v33 }
 0x221   :  { %1720 = vmatprep.subr.mxu1 %v763_v32  ;;  %1732 = vmatprep.mubr.msk.f32.mxu1 %vm523_vm5, %v501_v33 }
 0x222   :  { %1693 = vmatmul.mubr.msk.f32.vlgmr.msra.gmra.mxu0 %vm523_vm5, %v502_v36  ;;  %1721 = vmatpush3.msra.mxu1 %v763_v32  ;;  %v489_v38 = vpop.permute.xlu1 %488 }
 0x223   :  { %1722 = vmatprep.subr.mxu1 %v762_v35  ;;  %v503_v41 = vsel %vm500_vm6, %v498_v37, %v489_v38  ;;  %1739 = vmatpush3.msk.msra.mxu0 %vm634_vm1, %v2104_v54 }
 0x224   :  { %1723 = vmatpush3.msra.mxu1 %v762_v35  ;;  %1695 = vmatprep.mubr.msk.f32.mxu0 %vm523_vm5, %v503_v41 }
 0x225   :  { %1724 = vmatprep.subr.mxu1 %v761_v39  ;;  %1740 = vmatprep.subr.mxu0 %v507_v40 }
 0x226   :  { %1725 = vmatpush3.msra.mxu1 %v761_v39  ;;  %v491_v44 = vpop.permute.xlu1 %490  ;;  %1741 = vmatpush3.msra.mxu0 %v507_v40 }
 0x227   :  { %1726 = vmatprep.subr.mxu1 %v760_v42  ;;  %v504_v46 = vsel %vm500_vm6, %v499_v43, %v491_v44 }
 0x228   :  { %1727 = vmatpush3.msra.mxu1 %v760_v42  ;;  %1696 = vmatmul.mubr.msk.f32.gmra.mxu0 %vm523_vm5, %v504_v46 }
 0x229   :  { %1728 = vmatprep.subr.mxu1 %v759_v45  ;;  %1742 = vmatprep.mubr.msk.f32.mxu0 %vm621_vm4, %v2121_v20 }
 0x22a   :  { %1729 = vmatpush3.msra.mxu1 %v759_v45 }
 0x22b   :  { %1730 = vmatprep.subr.mxu1 %v758_v47 }
 0x22c   :  { %1731 = vmatpush3.msra.mxu1 %v758_v47  ;;  %1743 = vmatmul.mubr.msk.f32.vlgmr.msra.gmra.mxu0 %vm621_vm4, %v2124_v21  ;;  %v509_v47 = vld [vmem:[%s2377_s5] sm:$0xff] }
 0x22d   :  { %1733 = vmatmul.mubr.msk.f32.vlgmr.msra.gmra.mxu1 %vm523_vm5, %v502_v36  ;;  %1745 = vmatprep.mubr.msk.f32.mxu0 %vm621_vm4, %v2142_v26 }
 0x22e   :  { %1735 = vmatprep.mubr.msk.f32.mxu1 %vm523_vm5, %v503_v41 }
 0x230   :  { %1746 = vmatmul.mubr.msk.f32.gmra.mxu0 %vm621_vm4, %v2145_v27 }
 0x231   :  { %1736 = vmatmul.mubr.msk.f32.gmra.mxu1 %vm523_vm5, %v504_v46  ;;  %1756 = vmatprep.mubr.msk.f32.mxu0 %vm53_vm0, %v1982_v8  ;;  %v510_v46 = vld [vmem:[%s2377_s5 + $0x8] sm:$0xf] }
 0x232   :  { %1770 = vmatprep.mubr.msk.f32.mxu1 %vm53_vm0, %v1982_v8 }
 0x2d4   :  { %v1704_v48 = vpop.f32.mrf.mxu1 }
 0x2d6   :  { %v704_v49 = vpop.f32.mrf.mxu1 }
 0x2d9   :  { %v1707_v56 = vpop.f32.mrf.mxu1 }
 0x2db   :  { %v714_v61 = vpop.f32.mrf.mxu1 }
 0x2e2   :  { %v1694_v50 = vpop.f32.mrf.mxu0 }
 0x2e3   :  { %v710_v52 = vadd.f32 %v1704_v48, %v1694_v50  ;;  %v1204_v48 = vld [vmem:[%s2378_s8 + $0x20] sm:$0xff]  ;;  %v1202_v50 = vld [vmem:[%s2378_s8 + $0x10] sm:$0xff] }
 0x2e4   :  { %v602_v53 = vpop.f32.mrf.mxu0 }
 0x2e5   :  { %v731_v54 = vadd.f32 %v1461_v51, %v710_v52  ;;  %v705_v55 = vadd.f32 %v704_v49, %v602_v53  ;;  %v1203_v49 = vld [vmem:[%s2378_s8 + $0x18] sm:$0xff]  ;;  %v1200_v52 = vld [vmem:[%s2378_s8] sm:$0xff] }
 0x2e7   :  { %v730_v57 = vadd.f32 %v1461_v51, %v705_v55  ;;  %v1463_v58 = vmul.f32 -1.442695, %v731_v54 }
 0x2e8   :  { %v1697_v59 = vpop.f32.mrf.mxu0 }
 0x2e9   :  { %v720_v60 = vadd.f32 %v1707_v56, %v1697_v59  ;;  %v1462_v62 = vmul.f32 -1.442695, %v730_v57  ;;  %1820 = vpow2.f32 %v1463_v58 }
 0x2ea   :  { %v612_v63 = vpop.f32.mrf.mxu0 }
 0x2eb   :  { %v733_v8 = vadd.f32 %v1461_v51, %v720_v60  ;;  %v715_v12 = vadd.f32 %v714_v61, %v612_v63  ;;  %1822 = vpow2.f32 %v1462_v62 }
 0x2ec   :  { %v1744_v13 = vpop.f32.mrf.mxu0 }
 0x2ed   :  { %v1465_v14 = vmul.f32 -1.442695, %v733_v8  ;;  %v732_v15 = vadd.f32 %v1461_v51, %v715_v12  ;;  %v1734_v16 = vpop.f32.mrf.mxu1  ;;  %v1201_v51 = vld [vmem:[%s2378_s8 + $0x8] sm:$0xff] }
 0x2ee   :  { %v2219_v17 = vadd.f32 %v1744_v13, %v1734_v16  ;;  %v924_v18 = vpop.f32.mrf.mxu0 }
 0x2ef   :  { %1824 = vpow2.f32 %v1465_v14  ;;  %v1464_v19 = vmul.f32 -1.442695, %v732_v15  ;;  %v836_v22 = vpop.f32.mrf.mxu1 }
 0x2f0   :  { %v2221_v6 = vadd.f32 %v924_v18, %v836_v22  ;;  %v1747_v4 = vpop.f32.mrf.mxu0 }
 0x2f1   :  { %1826 = vpow2.f32 %v1464_v19  ;;  %v1737_v23 = vpop.f32.mrf.mxu1 }
 0x2f2   :  { %v2223_v24 = vadd.f32 %v1747_v4, %v1737_v23  ;;  %v2251_v41 = vpop.f32.mrf.mxu0 }
 0x2f3   :  { %v846_v53 = vpop.f32.mrf.mxu1 }
 0x2f6   :  { %v1821_v25 = vpop.eup %1820 }
 0x2f7   :  { %v747_v28 = vadd.f32 1.0, %v1821_v25 }
 0x2f8   :  { %v1823_v2 = vpop.eup %1822 }
 0x2f9   :  { %v746_v31 = vadd.f32 1.0, %v1823_v2 }
 0x2fc   :  { %v1825_v0 = vpop.eup %1824 }
 0x2fd   :  { %v749_v29 = vadd.f32 1.0, %v1825_v0 }
 0x2fe   :  { %v1827_v30 = vpop.eup %1826 }
 0x2ff   :  { %1828 = vrcp.f32 %v749_v29  ;;  %v748_v32 = vadd.f32 1.0, %v1827_v30 }
 0x300   :  { %1830 = vrcp.f32 %v747_v28 }
 0x301   :  { %1832 = vrcp.f32 %v748_v32  ;;  %v1475_v32 = vld [vmem:[%s2379_s10] ss:$0 sm:$0xff] }
 0x302   :  { %1834 = vrcp.f32 %v746_v31 }
 0x30c   :  { %v1829_v33 = vpop.eup %1828 }
 0x30d   :  { %v1831_v34 = vpop.eup %1830  ;;  %v2226_v35 = vmul.f32 %v1829_v33, %v1937_v1  ;;  %v951_v33 = vadd.f32 %v1475_v32, %v2219_v17 }
 0x30e   :  { %v1833_v36 = vpop.eup %1832  ;;  %v2235_v39 = vmul.f32 %v1831_v34, %v1961_v5  ;;  %v935_v34 = vadd.f32 %v2251_v41, %v846_v53 }
 0x30f   :  { %1748 = vmatprep.subr.mxu0 %v2226_v35  ;;  %v2230_v37 = vmul.f32 %v1833_v36, %v1949_v3  ;;  %v1835_v38 = vpop.eup %1834  ;;  %v950_v36 = vadd.f32 %v1475_v32, %v2221_v6 }
 0x310   :  { %1749 = vmatpush3.msra.mxu0 %v2226_v35  ;;  %v2240_v40 = vmul.f32 %v1835_v38, %v1975_v7  ;;  %v952_v38 = vadd.f32 %v1475_v32, %v935_v34 }
 0x311   :  { %1750 = vmatprep.subr.mxu0 %v2230_v37 }
 0x312   :  { %1751 = vmatpush3.msra.mxu0 %v2230_v37 }
 0x313   :  { %1752 = vmatprep.subr.mxu0 %v2235_v39 }
 0x314   :  { %1753 = vmatpush3.msra.mxu0 %v2235_v39 }
 0x315   :  { %1754 = vmatprep.subr.mxu0 %v2240_v40 }
 0x316   :  { %1755 = vmatpush3.msra.mxu0 %v2240_v40 }
 0x317   :  { %1757 = vmatmul.mubr.msk.f32.vlgmr.msra.gmra.mxu0 %vm53_vm0, %v1991_v9 }
 0x318   :  { %1759 = vmatprep.mubr.msk.f32.mxu0 %vm53_vm0, %v1999_v10 }
 0x31b   :  { %1760 = vmatmul.mubr.msk.f32.gmra.mxu0 %vm53_vm0, %v2013_v11 }
 0x3d7   :  { %v1758_v42 = vpop.f32.mrf.mxu0 }
 0x3d8   :  { %1166 = vrot.lane.b32.xlu1 %v1758_v42, %s1860_s25 }
 0x3d9   :  { %v1048_v43 = vpop.f32.mrf.mxu0 }
 0x3da   :  { %1164 = vrot.lane.b32.xlu0 %v1048_v43, %s1860_s25 }
 0x3db   :  { %v1761_v44 = vpop.f32.mrf.mxu0 }
 0x3dc   :  { %1170 = vrot.lane.b32.xlu1 %v1761_v44, %s1860_s25  ;;  %1762 = vmatprep.subr.mxu1 %v1761_v44 }
 0x3dd   :  { %v1058_v45 = vpop.f32.mrf.mxu0  ;;  %1763 = vmatpush3.msra.mxu1 %v1761_v44 }
 0x3de   :  { %1168 = vrot.lane.b32.xlu0 %v1058_v45, %s1860_s25  ;;  %1764 = vmatprep.subr.mxu1 %v1058_v45 }
 0x3df   :  { %1765 = vmatpush3.msra.mxu1 %v1058_v45 }
 0x3e0   :  { %1766 = vmatprep.subr.mxu1 %v1758_v42 }
 0x3e1   :  { %1767 = vmatpush3.msra.mxu1 %v1758_v42  ;;  %v1478_v42 = vmul.f32 -1.442695, %v952_v38 }
 0x3e2   :  { %1768 = vmatprep.subr.mxu1 %v1048_v43 }
 0x3e3   :  { %1769 = vmatpush3.msra.mxu1 %v1048_v43 }
 0x3e4   :  { %1771 = vmatmul.mubr.msk.f32.vlgmr.msra.gmra.mxu1 %vm53_vm0, %v1991_v9  ;;  %1806 = vmatprep.subr.msk.mxu1 %vm634_vm1, %v510_v46  ;;  %v1211_v9 = vld [vmem:[%s2378_s8 + $0x58] sm:$0xff] }
 0x3e5   :  { %1773 = vmatprep.mubr.msk.f32.mxu1 %vm53_vm0, %v1999_v10  ;;  %1807 = vmatpush3.msk.msra.mxu1 %vm634_vm1, %v510_v46  ;;  %v1210_v10 = vld [vmem:[%s2378_s8 + $0x50] sm:$0xff] }
 0x3e6   :  { %1808 = vmatprep.subr.mxu1 %v509_v47  ;;  %1776 = vmatprep.subr.mxu0 %v1211_v9 }
 0x3e7   :  { %1809 = vmatpush3.msra.mxu1 %v509_v47  ;;  %1777 = vmatpush3.msra.mxu0 %v1211_v9 }
 0x3e8   :  { %1774 = vmatmul.mubr.msk.f32.gmra.mxu1 %vm53_vm0, %v2013_v11  ;;  %v1209_v11 = vld [vmem:[%s2378_s8 + $0x48] sm:$0xff]  ;;  %1778 = vmatprep.subr.mxu0 %v1210_v10 }
 0x3e9   :  { %1810 = vmatprep.mubr.msk.f32.mxu1 %vm621_vm4, %v2121_v20  ;;  %1779 = vmatpush3.msra.mxu0 %v1210_v10  ;;  %v1208_v20 = vld [vmem:[%s2378_s8 + $0x40] sm:$0xff] }
 0x3ea   :  { %1780 = vmatprep.subr.mxu0 %v1209_v11 }
 0x3eb   :  { %1781 = vmatpush3.msra.mxu0 %v1209_v11 }
 0x3ec   :  { %1811 = vmatmul.mubr.msk.f32.vlgmr.msra.gmra.mxu1 %vm621_vm4, %v2124_v21  ;;  %v1207_v21 = vld [vmem:[%s2378_s8 + $0x38] sm:$0xff]  ;;  %1782 = vmatprep.subr.mxu0 %v1208_v20 }
 0x3ed   :  { %1813 = vmatprep.mubr.msk.f32.mxu1 %vm621_vm4, %v2142_v26  ;;  %1783 = vmatpush3.msra.mxu0 %v1208_v20  ;;  %v1206_v26 = vld [vmem:[%s2378_s8 + $0x30] sm:$0xff] }
 0x3ee   :  { %1784 = vmatprep.subr.mxu0 %v1207_v21 }
 0x3ef   :  { %1785 = vmatpush3.msra.mxu0 %v1207_v21 }
 0x3f0   :  { %1814 = vmatmul.mubr.msk.f32.gmra.mxu1 %vm621_vm4, %v2145_v27  ;;  %v1205_v27 = vld [vmem:[%s2378_s8 + $0x28] sm:$0xff]  ;;  %1786 = vmatprep.subr.mxu0 %v1206_v26 }
 0x3f1   :  { %1787 = vmatpush3.msra.mxu0 %v1206_v26 }
 0x3f2   :  { %1788 = vmatprep.subr.mxu0 %v1205_v27 }
 0x3f3   :  { %1789 = vmatpush3.msra.mxu0 %v1205_v27 }
 0x3f4   :  { %1790 = vmatprep.subr.mxu0 %v1204_v48 }
 0x3f5   :  { %1791 = vmatpush3.msra.mxu0 %v1204_v48 }
 0x3f6   :  { %1792 = vmatprep.subr.mxu0 %v1203_v49 }
 0x3f7   :  { %1793 = vmatpush3.msra.mxu0 %v1203_v49 }
 0x3f8   :  { %1794 = vmatprep.subr.mxu0 %v1202_v50 }
 0x3f9   :  { %1795 = vmatpush3.msra.mxu0 %v1202_v50 }
 0x3fa   :  { %1796 = vmatprep.subr.mxu0 %v1201_v51 }
 0x3fb   :  { %1797 = vmatpush3.msra.mxu0 %v1201_v51 }
 0x3fc   :  { %1798 = vmatprep.subr.mxu0 %v1200_v52 }
 0x3fd   :  { %1799 = vmatpush3.msra.mxu0 %v1200_v52 }
 0x44a   :  { %v1167_v13 = vpop.permute.xlu1 %1166 }
 0x44b   :  { %v1193_v4 = vsel %vm53_vm0, %v2235_v39, %v1167_v13 }
 0x44c   :  { %v1165_v14 = vpop.permute.xlu0 %1164 }
 0x44d   :  { %v1192_v19 = vsel %vm53_vm0, %v2240_v40, %v1165_v14 }
 0x44e   :  { %v1171_v15 = vpop.permute.xlu1 %1170 }
 0x44f   :  { %v1195_v29 = vsel %vm53_vm0, %v2226_v35, %v1171_v15 }
 0x450   :  { %v1169_v16 = vpop.permute.xlu0 %1168 }
 0x451   :  { %v1194_v0 = vsel %vm53_vm0, %v2230_v37, %v1169_v16 }
 0x4a4   :  { %v1772_v54 = vpop.f32.mrf.mxu1 }
 0x4a5   :  { %v1153_v55 = vmul.f32 2.0, %v1772_v54 }
 0x4a6   :  { %v1133_v56 = vpop.f32.mrf.mxu1 }
 0x4a7   :  { %v1157_v57 = vsub.f32 %v1153_v55, %v2235_v39  ;;  %v1152_v58 = vmul.f32 2.0, %v1133_v56  ;;  %v1476_v39 = vmul.f32 -1.442695, %v950_v36 }
 0x4a8   :  { %v1775_v59 = vpop.f32.mrf.mxu1 }
 0x4a9   :  { %v1156_v60 = vsub.f32 %v1152_v58, %v2240_v40  ;;  %v1155_v61 = vmul.f32 2.0, %v1775_v59  ;;  %1182 = vrot.lane.b32.xlu1 %v1157_v57, %s1863_s18 }
 0x4aa   :  { %v1143_v62 = vpop.f32.mrf.mxu1 }
 0x4ab   :  { %v1159_v63 = vsub.f32 %v1155_v61, %v2226_v35  ;;  %v1154_v8 = vmul.f32 2.0, %v1143_v62  ;;  %1180 = vrot.lane.b32.xlu0 %v1156_v60, %s1863_s18  ;;  %v953_v35 = vadd.f32 %v1475_v32, %v2223_v24  ;;  %v1497_v24 = vld [vmem:[%s2380_s11] ss:$0 sm:$0xff] }
 0x4ac   :  { %v1812_v44 = vpop.f32.mrf.mxu1 }
 0x4ad   :  { %v1158_v12 = vsub.f32 %v1154_v8, %v2230_v37  ;;  %1186 = vrot.lane.b32.xlu1 %v1159_v63, %s1863_s18  ;;  %v1477_v37 = vmul.f32 -1.442695, %v951_v33  ;;  %v1479_v40 = vmul.f32 -1.442695, %v953_v35 }
 0x4ae   :  { %v1378_v47 = vpop.f32.mrf.mxu1 }
 0x4af   :  { %1184 = vrot.lane.b32.xlu0 %v1158_v12, %s1863_s18  ;;  %1836 = vpow2.f32 %v1477_v37 }
 0x4b0   :  { %1838 = vpow2.f32 %v1476_v39  ;;  %v1815_v21 = vpop.f32.mrf.mxu1 }
 0x4b1   :  { %1840 = vpow2.f32 %v1479_v40 }
 0x4b2   :  { %1842 = vpow2.f32 %v1478_v42  ;;  %v1388_v52 = vpop.f32.mrf.mxu1 }
 0x4bc   :  { %v1837_v43 = vpop.eup %1836 }
 0x4bd   :  { %v1839_v45 = vpop.eup %1838  ;;  %v967_v17 = vadd.f32 1.0, %v1837_v43 }
 0x4be   :  { %v1841_v46 = vpop.eup %1840  ;;  %v966_v9 = vadd.f32 1.0, %v1839_v45 }
 0x4bf   :  { %v1843_v41 = vpop.eup %1842  ;;  %v969_v6 = vadd.f32 1.0, %v1841_v46  ;;  %1844 = vrcp.f32 %v967_v17 }
 0x4c0   :  { %v968_v20 = vadd.f32 1.0, %v1843_v41  ;;  %1846 = vrcp.f32 %v966_v9 }
 0x4c1   :  { %1848 = vrcp.f32 %v969_v6 }
 0x4cc   :  { %v1845_v57 = vpop.eup %1844 }
 0x4cd   :  { %v1847_v58 = vpop.eup %1846  ;;  %v1417_v60 = vsub.f32 1.0, %v1845_v57  ;;  %v1413_v63 = vmul.f32 %v1845_v57, %v1961_v5 }
 0x4ce   :  { %v1849_v59 = vpop.eup %1848  ;;  %v1416_v12 = vsub.f32 1.0, %v1847_v58  ;;  %v1412_v15 = vmul.f32 %v1847_v58, %v1975_v7 }
 0x51b   :  { %v1183_v18 = vpop.permute.xlu1 %1182 }
 0x51c   :  { %v1197_v25 = vsel %vm500_vm6, %v1193_v4, %v1183_v18  ;;  %v1419_v18 = vsub.f32 1.0, %v1849_v59  ;;  %v1415_v4 = vmul.f32 %v1849_v59, %v1937_v1 }
 0x51d   :  { %v1181_v22 = vpop.permute.xlu0 %1180 }
 0x51e   :  { %v1196_v23 = vsel %vm500_vm6, %v1192_v19, %v1181_v22 }
 0x51f   :  { %1800 = vmatprep.mubr.msk.f32.mxu0 %vm523_vm5, %v1196_v23  ;;  %v1187_v2 = vpop.permute.xlu1 %1186 }
 0x520   :  { %1801 = vmatmul.mubr.msk.f32.vlgmr.msra.gmra.mxu0 %vm523_vm5, %v1197_v25  ;;  %v1199_v31 = vsel %vm500_vm6, %v1195_v29, %v1187_v2 }
 0x521   :  { %v1185_v28 = vpop.permute.xlu0 %1184 }
 0x522   :  { %v1198_v30 = vsel %vm500_vm6, %v1194_v0, %v1185_v28 }
 0x523   :  { %1803 = vmatprep.mubr.msk.f32.mxu0 %vm523_vm5, %v1198_v30 }
 0x524   :  { %1804 = vmatmul.mubr.msk.f32.gmra.mxu0 %vm523_vm5, %v1199_v31 }
 0x5e0   :  { %v1802_v10 = vpop.f32.mrf.mxu0 }
 0x5e1   :  { %v1384_v11 = vadd.f32 %v1812_v44, %v1802_v10 }
 0x5e2   :  { %v1290_v26 = vpop.f32.mrf.mxu0 }
 0x5e3   :  { %v1405_v27 = vadd.f32 %v1497_v24, %v1384_v11  ;;  %v1379_v48 = vadd.f32 %v1378_v47, %v1290_v26 }
 0x5e4   :  { %v1805_v49 = vpop.f32.mrf.mxu0 }
 0x5e5   :  { %1850 = vtanh.f32 %v1405_v27  ;;  %v1404_v50 = vadd.f32 %v1497_v24, %v1379_v48  ;;  %v1394_v51 = vadd.f32 %v1815_v21, %v1805_v49 }
 0x5e6   :  { %1852 = vrcp.f32 %v968_v20  ;;  %v1300_v53 = vpop.f32.mrf.mxu0 }
 0x5e7   :  { %1854 = vtanh.f32 %v1404_v50  ;;  %v1407_v54 = vadd.f32 %v1497_v24, %v1394_v51  ;;  %v1389_v55 = vadd.f32 %v1388_v52, %v1300_v53 }
 0x5e9   :  { %1856 = vtanh.f32 %v1407_v54  ;;  %v1406_v56 = vadd.f32 %v1497_v24, %v1389_v55 }
 0x5eb   :  { %1858 = vtanh.f32 %v1406_v56 }
 0x5f2   :  { %v1851_v61 = vpop.eup %1850 }
 0x5f3   :  { %v1853_v62 = vpop.eup %1852  ;;  %v1421_v8 = vmul.f32 %v1851_v61, %v1417_v60 }
 0x5f4   :  { %v1855_v13 = vpop.eup %1854  ;;  %v1418_v25 = vsub.f32 1.0, %v1853_v62  ;;  %v1414_v2 = vmul.f32 %v1853_v62, %v1949_v3 }
 0x5f5   :  { %v1425_v14 = vadd.f32 %v1421_v8, %v1413_v63  ;;  %v1420_v16 = vmul.f32 %v1855_v13, %v1416_v12 }
 0x5f6   :  { %v1857_v19 = vpop.eup %1856 }
 0x5f7   :  { %1429 = vst.msk [vmem:[%s2381_s12 + $0x8] sm:$0xff] %vm53_vm0, %v1425_v14  ;;  %v1424_v22 = vadd.f32 %v1420_v16, %v1412_v15  ;;  %v1423_v23 = vmul.f32 %v1857_v19, %v1419_v18 }
 0x5f8   :  { %v1859_v5 = vpop.eup %1858 }
 0x5f9   :  { %1428 = vst.msk [vmem:[%s2381_s12] sm:$0xff] %vm53_vm0, %v1424_v22  ;;  %v1427_v7 = vadd.f32 %v1423_v23, %v1415_v4  ;;  %v1422_v0 = vmul.f32 %v1859_v5, %v1418_v25 }
 0x5fb   :  { %1431 = vst.msk [vmem:[%s2381_s12 + $0x18] sm:$0xff] %vm53_vm0, %v1427_v7  ;;  %v1426_v28 = vadd.f32 %v1422_v0, %v1414_v2 }
 0x5fd   :  { %1430 = vst.msk [vmem:[%s2381_s12 + $0x10] sm:$0xff] %vm53_vm0, %v1426_v28 }

</bundles_post_ra>
